<compile_context>
chip_gen: v5e
topology: v5e:2x2
jax: 0.10.0
libtpu: 0.0.40
codegen_flags: <defaults>
</compile_context>

<pallas_src>
import functools

import jax
import jax.numpy as jnp
from jax import lax
from jax.experimental import pallas as pl
from jax.experimental.pallas import tpu as pltpu


def next_power_of2(x: int) -> int:
    """Same semantics as hannah's helper: smallest power of two >= x."""
    return 1 if x <= 1 else 1 << (x - 1).bit_length()


def _lane_sum(x, acc_w: int):
    """Reduce (tm, tl) f32 -> (tm, acc_w).

    acc_w == 128: lane-dense partial sums (pure aligned VPU adds, no XLU).
    acc_w == 1  : full row-sum (single XLU reduce), used on untiled reductions.
    """
    if acc_w == 1:
        return jnp.sum(x, axis=-1, keepdims=True)
    tl = x.shape[1]
    n = tl // acc_w
    s = x[:, 0:acc_w]
    for j in range(1, n):
        s = s + x[:, j * acc_w:(j + 1) * acc_w]
    return s


def _approx_gap1d_kernel(x_ref, o_ref, acc_ref, *,
                         inv_divisor: float, l_total: int, l_tile: int,
                         mask_l: bool, acc_w: int, single_k: bool):
    """Grid: (row_blocks, l_blocks).  x_ref: (TM, TL); o_ref: (TM, 1)."""
    if single_k:
        # Whole reduction fits in one length tile: no accumulator round-trip.
        x = x_ref[...].astype(jnp.float32)
        o_ref[...] = (jnp.sum(x, axis=-1, keepdims=True)
                      * inv_divisor).astype(o_ref.dtype)
        return

    k = pl.program_id(1)
    last = pl.num_programs(1) - 1

    @pl.when(k == 0)
    def _init():
        acc_ref[...] = jnp.zeros_like(acc_ref)

    if mask_l:
        # Mask work (iota + cmp + select) only ever runs on the final tile.
        @pl.when(k != last)
        def _body():
            acc_ref[...] += _lane_sum(x_ref[...].astype(jnp.float32), acc_w)

        @pl.when(k == last)
        def _body_masked():
            x = x_ref[...].astype(jnp.float32)
            col = k * l_tile + lax.broadcasted_iota(jnp.int32, x.shape, 1)
            x = jnp.where(col < l_total, x, 0.0)
            acc_ref[...] += _lane_sum(x, acc_w)
    else:
        acc_ref[...] += _lane_sum(x_ref[...].astype(jnp.float32), acc_w)

    @pl.when(k == last)
    def _finalize():
        # Cross-lane 128->1 reduce + exact power-of-two reciprocal scale,
        # done once per row block in the epilogue.
        o_ref[...] = (jnp.sum(acc_ref[...], axis=-1, keepdims=True)
                      * inv_divisor).astype(o_ref.dtype)


def _choose_tiles(rows: int, l: int, itemsize: int):
    """Pick (tm, tl, mask_l) so the input block is ~8 MiB and lane-friendly."""
    target_bytes = 8 * 1024 * 1024
    max_tl = 8192                       # cap on length-tile elements
    sub = {1: 32, 2: 16}.get(itemsize, 8)   # sublane-packing-safe row multiple

    # --- length tile ---
    if l <= max_tl:
        tl = l                           # full extent: single k step, no mask
        mask_l = False
    else:
        tl = 0
        # Prefer a multiple of 128 that divides L -> no masking anywhere.
        for cand in range(max_tl - (max_tl % 128), 127, -128):
            if l % cand == 0:
                tl = cand
                break
        if tl == 0:
            tl = max_tl                  # fall back to masking the last tile
        mask_l = (l % tl) != 0

    # --- row tile from byte budget ---
    budget_rows = max(sub, (target_bytes // max(1, tl * itemsize)) // sub * sub)
    tm = rows if rows <= budget_rows else budget_rows

    # Ensure grid[0] >= 2 on large inputs so both v7x TensorCores get work
    # (no-op cost on single-TC v5e/v6e).
    total_bytes = rows * l * itemsize
    if tm == rows and rows >= 2 * sub and total_bytes >= (4 << 20):
        half = (rows + 1) // 2
        tm = ((half + sub - 1) // sub) * sub

    return tm, tl, mask_l


def approximate_global_average_pooling_1d(x: jax.Array, size: int) -> jax.Array:
    """x: (B, C, L) with L == size. Returns (B, C, 1)."""
    B, C, L = x.shape
    assert L == size, f"expected spatial length {size}, got {L}"
    divisor = float(next_power_of2(size))
    inv_divisor = 1.0 / divisor          # power of two -> exact reciprocal

    rows = B * C
    x2 = x.reshape(rows, L)              # free, contiguous reshape

    itemsize = jnp.dtype(x.dtype).itemsize
    tm, tl, mask_l = _choose_tiles(rows, L, itemsize)

    grid = (pl.cdiv(rows, tm), pl.cdiv(L, tl))
    single_k = grid[1] == 1
    # Lane-dense accumulator only pays off when the reduction is actually
    # tiled along L (and requires tl to be a multiple of 128).
    acc_w = 128 if (not single_k and tl % 128 == 0) else 1

    kernel = functools.partial(
        _approx_gap1d_kernel,
        inv_divisor=inv_divisor, l_total=L, l_tile=tl,
        mask_l=mask_l, acc_w=acc_w, single_k=single_k)

    block_bytes = tm * tl * itemsize
    acc_bytes = tm * acc_w * 4
    vmem_limit = int(min(48 << 20,
                         max(32 << 20, 2 * block_bytes + acc_bytes + (4 << 20))))

    cost = pl.CostEstimate(
        flops=rows * L,                  # adds for the reduction
        transcendentals=0,
        bytes_accessed=rows * L * itemsize + rows * itemsize)

    out2 = pl.pallas_call(
        kernel,
        out_shape=jax.ShapeDtypeStruct((rows, 1), x.dtype),
        grid_spec=pltpu.PrefetchScalarGridSpec(
            num_scalar_prefetch=0,
            grid=grid,
            in_specs=[pl.BlockSpec((tm, tl), lambda i, k: (i, k))],
            # Output block index constant along k -> resident accumulator
            # output; writeback volume is <= 1/L of the read traffic.
            out_specs=pl.BlockSpec((tm, 1), lambda i, k: (i, 0)),
            scratch_shapes=[pltpu.VMEM((tm, acc_w), jnp.float32)],
        ),
        compiler_params=pltpu.CompilerParams(
            dimension_semantics=("parallel", "arbitrary"),
            vmem_limit_bytes=vmem_limit,
        ),
        cost_estimate=cost,
    )(x2)

    return out2.reshape(B, C, 1)


# TODO(synk): qconfig branches (prequantize / activation_post_process fake-quant)
# are not translated; the module is modeled with qconfig=None.


if __name__ == "__main__":
    key = jax.random.PRNGKey(0)

    # Small shape consistent with a 1D conv feature map: (batch, channels, length)
    B, C, L = 2, 4, 12            # size=12 -> divisor=16 (the "approximate" part)
    x = jax.random.normal(key, (B, C, L), dtype=jnp.float32)
    out = jax.block_until_ready(approximate_global_average_pooling_1d(x, size=L))
    ref = jnp.sum(x, axis=2, keepdims=True) / next_power_of2(L)
    assert out.shape == (B, C, 1), out.shape
    assert jnp.allclose(out, ref, atol=1e-5, rtol=1e-5), "mismatch vs reference (small)"

    # Shape exercising the tiled-reduction path: L > 8192 with no 128-multiple
    # divisor (masked final tile, gated by pl.when), lane-dense accumulator,
    # and a row split so grid[0] >= 2 (partial last row block).
    B2, C2, L2 = 3, 40, 16500
    x2 = jax.random.normal(jax.random.PRNGKey(0), (B2, C2, L2), dtype=jnp.float32)
    out2 = jax.block_until_ready(approximate_global_average_pooling_1d(x2, size=L2))
    ref2 = jnp.sum(x2, axis=2, keepdims=True) / next_power_of2(L2)
    assert out2.shape == (B2, C2, 1), out2.shape
    assert jnp.allclose(out2, ref2, atol=1e-3, rtol=1e-4), "mismatch vs reference (tiled)"

    print("KERNEL_OK")
</pallas_src>

<mosaic_0001>
module attributes {stable_mosaic.version = 11 : i64} {
  func.func @_approx_gap1d_kernel(%arg0: i32, %arg1: i32, %arg2: memref<8x12xf32, #tpu.memory_space<vmem>>, %arg3: memref<8x1xf32, #tpu.memory_space<vmem>>, %arg4: memref<8x1xf32, #tpu.memory_space<vmem>>) attributes {dimension_semantics = [#tpu.dimension_semantics<parallel>, #tpu.dimension_semantics<arbitrary>], iteration_bounds = array<i64: 1, 1>, scalar_prefetch = 0 : i64, scratch_operands = 1 : i64, tpu.core_type = #tpu.core_type<tc>, window_params = [{transform_indices = @transform_0, window_bounds = array<i64: 8, 12>}, {transform_indices = @transform_1, window_bounds = array<i64: 8, 1>}]} {
    %c0 = arith.constant 0 : index
    %c0_0 = arith.constant 0 : index
    %0 = vector.load %arg2[%c0, %c0_0] : memref<8x12xf32, #tpu.memory_space<vmem>>, vector<8x12xf32>
    %cst = arith.constant dense<0.000000e+00> : vector<8xf32>
    %1 = vector.multi_reduction <add>, %0, %cst [1] : vector<8x12xf32> to vector<8xf32>
    %2 = vector.shape_cast %1 : vector<8xf32> to vector<8x1xf32>
    %cst_1 = arith.constant 6.250000e-02 : f32
    %3 = vector.broadcast %cst_1 : f32 to vector<8x1xf32>
    %4 = arith.mulf %2, %3 : vector<8x1xf32>
    %c0_2 = arith.constant 0 : index
    %c0_3 = arith.constant 0 : index
    %5 = vector.load %arg3[%c0_2, %c0_3] : memref<8x1xf32, #tpu.memory_space<vmem>>, vector<8x1xf32>
    tpu.vector_store %arg3[%c0_2, %c0_3], %4 {strides = array<i32>} : memref<8x1xf32, #tpu.memory_space<vmem>>, vector<8x1xf32>,
    return
  }
  func.func @transform_0(%arg0: i32, %arg1: i32) -> (i32, i32) {
    %c0_i32 = arith.constant 0 : i32
    return %arg0, %arg1 : i32, i32
  }
  func.func @transform_1(%arg0: i32, %arg1: i32) -> (i32, i32) {
    %c0_i32 = arith.constant 0 : i32
    %c0_i32_0 = arith.constant 0 : i32
    return %arg0, %c0_i32 : i32, i32
  }
}

</mosaic_0001>

<bundles_post_ra>
// kernel: tpu_custom_call.1
= control target key start
LH: loop header
LB: loop body
LE: loop exit
PB: predicated region body
PF: predicated region fallthrough
CT: control target
= control target key end

     0   :  { %6 = vsyncpa [#allocation4], 0  ;;  %s62_s9 = smov [#allocation3]   ;;  %s79_s0 = inlined_call_operand.hbm [shape: f32[8,12], index: 0, kind: input, shape index: {}]   ;;  %s80_s1 = inlined_call_operand.vmem [shape: f32[8,1], index: 1, kind: output, shape index: {}]  }
   0x1   :  { %s12_s8 = sshll.u32 %s79_s0, 4  ;;  %s14_s10 = sshll.u32 %s62_s9, 4  ;;  %s13_s8 = int_to_ptr.hbm [resolvable:$true] %s12_s8  ;;  %s15_s10 = int_to_ptr.vmem [resolvable:$true] %s14_s10 }
   0x2   :  { %17 = dma.hbm_to_vmem [thread:$0]  %s13_s8, 128, %s15_s10, [#allocation4]  }
   0x3   :  { %60 = dma.done.wait [#allocation4], 128  }
   0x4   :  { %61 = vsyncadd [#allocation4], 4294967168  ;;  %vm23_vm0 = vcmask 97280   ;;  %v22_v0 = vld [vmem:[#allocation3] sm:$0xff]  ;;  %vm28_vm1 = vcmask 7168  }
   0x5   :  { %v24_v1 = vsel %vm23_vm0, %v22_v0, 0.0 }
   0x6   :  { %25 = vadd.xlane.f32.xlu0 %v24_v1 }
  0x79   :  { %v26_v2 = vpop.xlane.xlu0 %25 }
  0x7a   :  { %v27_v3 = vmul.f32 0.0625, %v26_v2 }
  0x7c   :  { %29 = vst.msk [vmem:[%s80_s1] sm:$0xff] %vm28_vm1, %v27_v3 }
  0x7d   :  { %34 = vsyncpa [#allocation4], 1 }

</bundles_post_ra>
